<compile_context>
chip_gen: v6e
topology: v6e:2x2x1
jax: 0.10.0
libtpu: 0.0.40
codegen_flags: <defaults>
</compile_context>

<pallas_src>
import functools

import jax
import jax.numpy as jnp
from jax.experimental import pallas as pl
from jax.experimental.pallas import tpu as pltpu


# ----------------------------- kernels -----------------------------

def _bn_fused_kernel(x_ref, gamma_ref, beta_ref, o_ref, *, inv_n, eps):
    """Whole array resident in VMEM: stats + normalize in one shot."""
    x = x_ref[...].astype(jnp.float32)                       # [N, C]
    s = jnp.sum(x, axis=0, keepdims=True)                    # [1, C]
    sq = jnp.sum(x * x, axis=0, keepdims=True)               # [1, C]
    mean = s * inv_n
    var = jnp.maximum(sq * inv_n - mean * mean, 0.0)
    inv_std = jax.lax.rsqrt(var + eps)                       # EUP slot
    a = gamma_ref[...] * inv_std
    b = beta_ref[...] - mean * a
    o_ref[...] = (x * a + b).astype(o_ref.dtype)


def _bn_stats_kernel(x_ref, sum_ref, sq_ref, *, n_rows, tiles_per_core, n_tiles):
    """Pass 1: per-core partial sum / sum-of-squares, accumulated in the resident out block."""
    p = pl.program_id(0)          # parallel axis (per-TensorCore slice on v7x)
    i = pl.program_id(1)          # arbitrary (reduction) axis

    @pl.when(i == 0)
    def _():
        sum_ref[...] = jnp.zeros_like(sum_ref)
        sq_ref[...] = jnp.zeros_like(sq_ref)

    tn = x_ref.shape[0]
    block_idx = p * tiles_per_core + i
    # Must match the clamped index_map so row ids correspond to the loaded tile.
    row0 = jnp.minimum(block_idx, n_tiles - 1) * tn
    rows = row0 + jax.lax.broadcasted_iota(jnp.int32, x_ref.shape, 0)
    valid = (rows < n_rows) & (block_idx < n_tiles)
    x = jnp.where(valid, x_ref[...].astype(jnp.float32), 0.0)
    sum_ref[0:1, :] += jnp.sum(x, axis=0, keepdims=True)
    sq_ref[0:1, :] += jnp.sum(x * x, axis=0, keepdims=True)


def _bn_apply_kernel(x_ref, a_ref, b_ref, o_ref):
    """Pass 2: fused affine y = x * a + b (a/b broadcast over the row tile)."""
    y = x_ref[...].astype(jnp.float32) * a_ref[...] + b_ref[...]
    o_ref[...] = y.astype(o_ref.dtype)


# ----------------------------- wrapper -----------------------------

def _vmem_limit_bytes():
    try:
        cap = int(getattr(pltpu.get_tpu_info(), "vmem_capacity_bytes", 128 << 20))
    except Exception:
        cap = 64 << 20
    # Half the physical capacity is safe on v5e/v6e (128 MiB) and v7x (64 MiB).
    return min(cap // 2, 64 << 20)


def _pick_row_tile(nv, cv, x_itemsize, vmem_limit, row_tile=None):
    row_align = {4: 8, 2: 16, 1: 32}.get(int(x_itemsize), 8)
    if row_tile is None:
        # Pass 2 holds ~4 tiles (double-buffered in + out); keep them at ~half the limit.
        per_tile_budget = max(vmem_limit // 8, 1 << 20)
        row_tile = per_tile_budget // max(cv * max(int(x_itemsize), 4), 1)
    tn = min(int(row_tile), nv)
    if nv <= row_align:
        return max(nv, 1)
    return max(row_align, (tn // row_align) * row_align)


def batch_norm_1d_node(x, gamma, beta, *, eps=1e-5, momentum=0.1,
                       force_two_pass=False, row_tile=None,
                       fused_threshold_bytes=4 << 20):
    """Training-mode BatchNorm1d applied to node features x: [N, C] -> [N, C]."""
    # TODO(synk): cfg.bn.mom (momentum) only drives the running_mean/running_var buffer update,
    # which does not affect the training-mode forward output; that stateful update is not modelled.
    n, c = x.shape
    if n == 0:                                   # degenerate empty node set
        return x

    vmem_limit = _vmem_limit_bytes()
    gamma_f = gamma.astype(jnp.float32).reshape(1, c)
    beta_f = beta.astype(jnp.float32).reshape(1, c)

    # ---------- fast path: whole array fits VMEM -> one fused kernel ----------
    if (not force_two_pass) and n * c * 4 <= fused_threshold_bytes:
        return pl.pallas_call(
            functools.partial(_bn_fused_kernel, inv_n=1.0 / n, eps=float(eps)),
            out_shape=jax.ShapeDtypeStruct((n, c), x.dtype),
            in_specs=[pl.BlockSpec(memory_space=pltpu.MemorySpace.VMEM)] * 3,
            out_specs=pl.BlockSpec(memory_space=pltpu.MemorySpace.VMEM),
            compiler_params=pltpu.CompilerParams(vmem_limit_bytes=vmem_limit),
        )(x, gamma_f, beta_f)

    # ---------- two-pass path ----------
    # Lane-pack small feature dims via a free [n, c] -> [n/pack, c*pack] view (no HBM copy).
    pack = 1
    if c < 128 and 128 % c == 0 and n % (128 // c) == 0:
        pack = 128 // c
    nv, cv = n // pack, c * pack
    xv = x.reshape(nv, cv)

    tn = _pick_row_tile(nv, cv, x.dtype.itemsize, vmem_limit, row_tile)
    n_tiles = -(-nv // tn)
    num_cores = 2 if n_tiles >= 2 else 1         # split the reduction across v7x's 2 TCs
    tiles_per_core = -(-n_tiles // num_cores)

    # Pass 1: per-feature (per-lane-group) sum / sum-of-squares partials.
    psum, psq = pl.pallas_call(
        functools.partial(_bn_stats_kernel, n_rows=nv,
                          tiles_per_core=tiles_per_core, n_tiles=n_tiles),
        out_shape=(jax.ShapeDtypeStruct((num_cores * 8, cv), jnp.float32),
                   jax.ShapeDtypeStruct((num_cores * 8, cv), jnp.float32)),
        grid=(num_cores, tiles_per_core),
        in_specs=[pl.BlockSpec(
            (tn, cv),
            lambda p, i: (jnp.minimum(p * tiles_per_core + i, n_tiles - 1), 0))],
        out_specs=(pl.BlockSpec((8, cv), lambda p, i: (p, 0)),
                   pl.BlockSpec((8, cv), lambda p, i: (p, 0))),
        compiler_params=pltpu.CompilerParams(
            dimension_semantics=("parallel", "arbitrary"),
            vmem_limit_bytes=vmem_limit),
    )(xv)

    # Fold partials + fused affine coefficients in plain XLA (1xC work, negligible).
    total = psum.sum(axis=0)
    total_sq = psq.sum(axis=0)
    if pack > 1:
        total = total.reshape(pack, c).sum(axis=0)
        total_sq = total_sq.reshape(pack, c).sum(axis=0)
    mean = total / n
    var = jnp.maximum(total_sq / n - mean * mean, 0.0)     # clamp against f32 cancellation
    inv_std = jax.lax.rsqrt(var + float(eps))
    a = gamma.astype(jnp.float32) * inv_std
    b = beta.astype(jnp.float32) - mean * a
    if pack > 1:
        a = jnp.tile(a, pack)
        b = jnp.tile(b, pack)
    a2 = a.reshape(1, cv)
    b2 = b.reshape(1, cv)

    # Pass 2: y = x * a + b over row tiles ("parallel" -> sharded across v7x's 2 TCs).
    yv = pl.pallas_call(
        _bn_apply_kernel,
        out_shape=jax.ShapeDtypeStruct((nv, cv), x.dtype),
        grid=(n_tiles,),
        in_specs=[pl.BlockSpec((tn, cv), lambda i: (i, 0)),
                  pl.BlockSpec((1, cv), lambda i: (0, 0)),
                  pl.BlockSpec((1, cv), lambda i: (0, 0))],
        out_specs=pl.BlockSpec((tn, cv), lambda i: (i, 0)),
        compiler_params=pltpu.CompilerParams(
            dimension_semantics=("parallel",),
            vmem_limit_bytes=vmem_limit),
    )(xv, a2, b2)

    return yv.reshape(n, c)


# ----------------------------- demo / checks -----------------------------

if __name__ == "__main__":
    key = jax.random.PRNGKey(0)
    kx, kg, kb, kx2 = jax.random.split(key, 4)

    DIM_IN = 32            # node-feature width (batch.x: [num_nodes, dim_in])
    EPS = 1e-5             # cfg.bn.eps default

    gamma = 1.0 + 0.1 * jax.random.normal(kg, (DIM_IN,), dtype=jnp.float32)
    beta = 0.1 * jax.random.normal(kb, (DIM_IN,), dtype=jnp.float32)

    def ref_bn(x):
        mean = x.mean(axis=0)
        var = ((x - mean) ** 2).mean(axis=0)
        return (x - mean) / jnp.sqrt(var + EPS) * gamma + beta

    def check(y, x, name):
        r = ref_bn(x)
        err = float(jnp.max(jnp.abs(y - r)))
        assert jnp.allclose(y, r, atol=1e-3, rtol=1e-3), f"{name}: max abs err {err}"

    # 1) small graph -> single fused VMEM kernel (fast path).
    x1 = jax.random.normal(kx, (200, DIM_IN), dtype=jnp.float32) * 2.0 + 0.5
    y1 = batch_norm_1d_node(x1, gamma, beta, eps=EPS)
    jax.block_until_ready(y1)
    check(y1, x1, "fused")

    # 2) two-pass path, lane-packed view ([200,32] -> [50,128]), 2-way reduction split,
    #    ragged last tile masked.
    y2 = batch_norm_1d_node(x1, gamma, beta, eps=EPS, force_two_pass=True, row_tile=16)
    jax.block_until_ready(y2)
    check(y2, x1, "two-pass packed")

    # 3) two-pass path, unpacked (203 % 4 != 0), odd tile count -> exercises the clamped
    #    index_map + fully-masked duplicate block, plus masked partial last tile.
    x3 = jax.random.normal(kx2, (203, DIM_IN), dtype=jnp.float32) - 1.0
    y3 = batch_norm_1d_node(x3, gamma, beta, eps=EPS, force_two_pass=True, row_tile=48)
    jax.block_until_ready(y3)
    check(y3, x3, "two-pass ragged")

    print("KERNEL_OK")
</pallas_src>

<mosaic_0001>
module attributes {stable_mosaic.version = 11 : i64} {
  func.func @_bn_fused_kernel(%arg0: memref<200x32xf32, #tpu.memory_space<vmem>>, %arg1: memref<1x32xf32, #tpu.memory_space<vmem>>, %arg2: memref<1x32xf32, #tpu.memory_space<vmem>>, %arg3: memref<200x32xf32, #tpu.memory_space<vmem>>) attributes {dimension_semantics = [], scalar_prefetch = 0 : i64, scratch_operands = 0 : i64, tpu.core_type = #tpu.core_type<tc>} {
    %c0 = arith.constant 0 : index
    %c0_0 = arith.constant 0 : index
    %0 = vector.load %arg0[%c0, %c0_0] : memref<200x32xf32, #tpu.memory_space<vmem>>, vector<200x32xf32>
    %cst = arith.constant dense<0.000000e+00> : vector<32xf32>
    %1 = vector.multi_reduction <add>, %0, %cst [0] : vector<200x32xf32> to vector<32xf32>
    %2 = vector.shape_cast %1 : vector<32xf32> to vector<1x32xf32>
    %3 = arith.mulf %0, %0 : vector<200x32xf32>
    %cst_1 = arith.constant dense<0.000000e+00> : vector<32xf32>
    %4 = vector.multi_reduction <add>, %3, %cst_1 [0] : vector<200x32xf32> to vector<32xf32>
    %5 = vector.shape_cast %4 : vector<32xf32> to vector<1x32xf32>
    %cst_2 = arith.constant 5.000000e-03 : f32
    %6 = vector.broadcast %cst_2 : f32 to vector<1x32xf32>
    %7 = arith.mulf %2, %6 : vector<1x32xf32>
    %cst_3 = arith.constant 5.000000e-03 : f32
    %8 = vector.broadcast %cst_3 : f32 to vector<1x32xf32>
    %9 = arith.mulf %5, %8 : vector<1x32xf32>
    %10 = arith.mulf %7, %7 : vector<1x32xf32>
    %11 = arith.subf %9, %10 : vector<1x32xf32>
    %cst_4 = arith.constant 0.000000e+00 : f32
    %12 = vector.broadcast %cst_4 : f32 to vector<1x32xf32>
    %13 = arith.maximumf %11, %12 : vector<1x32xf32>
    %cst_5 = arith.constant 9.99999974E-6 : f32
    %14 = vector.broadcast %cst_5 : f32 to vector<1x32xf32>
    %15 = arith.addf %13, %14 : vector<1x32xf32>
    %16 = math.rsqrt %15 : vector<1x32xf32>
    %c0_6 = arith.constant 0 : index
    %c0_7 = arith.constant 0 : index
    %17 = vector.load %arg1[%c0_6, %c0_7] : memref<1x32xf32, #tpu.memory_space<vmem>>, vector<1x32xf32>
    %18 = arith.mulf %17, %16 : vector<1x32xf32>
    %c0_8 = arith.constant 0 : index
    %c0_9 = arith.constant 0 : index
    %19 = vector.load %arg2[%c0_8, %c0_9] : memref<1x32xf32, #tpu.memory_space<vmem>>, vector<1x32xf32>
    %20 = arith.mulf %7, %18 : vector<1x32xf32>
    %21 = arith.subf %19, %20 : vector<1x32xf32>
    %22 = vector.broadcast %18 : vector<1x32xf32> to vector<200x32xf32>
    %23 = arith.mulf %0, %22 : vector<200x32xf32>
    %24 = vector.broadcast %21 : vector<1x32xf32> to vector<200x32xf32>
    %25 = arith.addf %23, %24 : vector<200x32xf32>
    %c0_10 = arith.constant 0 : index
    %c0_11 = arith.constant 0 : index
    %26 = vector.load %arg3[%c0_10, %c0_11] : memref<200x32xf32, #tpu.memory_space<vmem>>, vector<200x32xf32>
    tpu.vector_store %arg3[%c0_10, %c0_11], %25 {strides = array<i32>} : memref<200x32xf32, #tpu.memory_space<vmem>>, vector<200x32xf32>,
    return
  }
}

</mosaic_0001>

<bundles_post_ra>
// kernel: tpu_custom_call.1
= control target key start
LH: loop header
LB: loop body
LE: loop exit
PB: predicated region body
PF: predicated region fallthrough
CT: control target
= control target key end

     0   :  { %vm39_vm0 = vcmask 261120   ;;  %s735_s0 = inlined_call_operand.vmem [shape: f32[200,32], index: 0, kind: input, shape index: {}]   ;;  %s736_s1 = inlined_call_operand.vmem [shape: f32[1,32], index: 1, kind: input, shape index: {}]   ;;  %s737_s2 = inlined_call_operand.vmem [shape: f32[1,32], index: 2, kind: input, shape index: {}]   ;;  %s738_s3 = inlined_call_operand.vmem [shape: f32[200,32], index: 3, kind: output, shape index: {}]  }
   0x1   :  { %v303_v0 = vld [vmem:[%s735_s0] sm:$0xff]  ;;  %v308_v1 = vld [vmem:[%s735_s0 + $0x8] sm:$0xff]  ;;  %v313_v2 = vld [vmem:[%s735_s0 + $0x10] sm:$0xff] }
   0x2   :  { %v318_v3 = vld [vmem:[%s735_s0 + $0x18] sm:$0xff]  ;;  %v40_v4 = vsel %vm39_vm0, %v303_v0, 0.0  ;;  %v41_v5 = vsel %vm39_vm0, %v308_v1, 0.0  ;;  %v43_v6 = vsel %vm39_vm0, %v313_v2, 0.0  ;;  %v329_v7 = vld [vmem:[%s735_s0 + $0x20] sm:$0xff]  ;;  %v336_v10 = vld [vmem:[%s735_s0 + $0x28] sm:$0xff]  ;;  %v95_v23 = vmul.f32 %v303_v0, %v303_v0 }
   0x3   :  { %v42_v8 = vadd.f32 %v41_v5, %v40_v4  ;;  %v45_v9 = vsel %vm39_vm0, %v318_v3, 0.0  ;;  %v47_v12 = vsel %vm39_vm0, %v329_v7, 0.0  ;;  %v343_v13 = vld [vmem:[%s735_s0 + $0x30] sm:$0xff]  ;;  %v49_v15 = vsel %vm39_vm0, %v336_v10, 0.0  ;;  %v350_v16 = vld [vmem:[%s735_s0 + $0x38] sm:$0xff]  ;;  %v357_v19 = vld [vmem:[%s735_s0 + $0x40] sm:$0xff] }
   0x4   :  { %v51_v18 = vsel %vm39_vm0, %v343_v13, 0.0  ;;  %v362_v21 = vld [vmem:[%s735_s0 + $0x48] sm:$0xff]  ;;  %v53_v22 = vsel %vm39_vm0, %v350_v16, 0.0  ;;  %v96_v24 = vmul.f32 %v308_v1, %v308_v1  ;;  %v97_v25 = vmul.f32 %v313_v2, %v313_v2  ;;  %v379_v29 = vld [vmem:[%s735_s0 + $0x50] sm:$0xff]  ;;  %v391_v36 = vld [vmem:[%s735_s0 + $0x58] sm:$0xff] }
   0x5   :  { %v44_v11 = vadd.f32 %v43_v6, %v42_v8  ;;  %v55_v27 = vsel %vm39_vm0, %v357_v19, 0.0  ;;  %v98_v28 = vmul.f32 %v318_v3, %v318_v3  ;;  %v57_v31 = vsel %vm39_vm0, %v362_v21, 0.0  ;;  %v401_v42 = vld [vmem:[%s735_s0 + $0x60] sm:$0xff]  ;;  %v411_v48 = vld [vmem:[%s735_s0 + $0x68] sm:$0xff]  ;;  %v421_v54 = vld [vmem:[%s735_s0 + $0x70] sm:$0xff] }
   0x6   :  { %v99_v32 = vmul.f32 %v329_v7, %v329_v7  ;;  %v120_v33 = vsel %vm39_vm0, %v95_v23, 0.0  ;;  %v121_v34 = vsel %vm39_vm0, %v96_v24, 0.0  ;;  %v123_v35 = vsel %vm39_vm0, %v97_v25, 0.0  ;;  %v431_v60 = vld [vmem:[%s735_s0 + $0x78] sm:$0xff]  ;;  %v441_v6 = vld [vmem:[%s735_s0 + $0x80] sm:$0xff]  ;;  %v461_v24 = vld [vmem:[%s735_s0 + $0x90] sm:$0xff] }
   0x7   :  { %v46_v14 = vadd.f32 %v45_v9, %v44_v11  ;;  %v122_v38 = vadd.f32 %v121_v34, %v120_v33  ;;  %v59_v39 = vsel %vm39_vm0, %v379_v29, 0.0  ;;  %v100_v40 = vmul.f32 %v336_v10, %v336_v10 }
   0x8   :  { %v125_v41 = vsel %vm39_vm0, %v98_v28, 0.0  ;;  %v61_v45 = vsel %vm39_vm0, %v391_v36, 0.0  ;;  %v101_v46 = vmul.f32 %v343_v13, %v343_v13  ;;  %v127_v47 = vsel %vm39_vm0, %v99_v32, 0.0 }
   0x9   :  { %v48_v17 = vadd.f32 %v47_v12, %v46_v14  ;;  %v124_v44 = vadd.f32 %v123_v35, %v122_v38  ;;  %v63_v51 = vsel %vm39_vm0, %v401_v42, 0.0  ;;  %v102_v52 = vmul.f32 %v350_v16, %v350_v16  ;;  %v481_v38 = vld [vmem:[%s735_s0 + $0xa0] sm:$0xff] }
   0xa   :  { %v129_v53 = vsel %vm39_vm0, %v100_v40, 0.0  ;;  %v65_v57 = vsel %vm39_vm0, %v411_v48, 0.0  ;;  %v103_v58 = vmul.f32 %v357_v19, %v357_v19  ;;  %v131_v59 = vsel %vm39_vm0, %v101_v46, 0.0 }
   0xb   :  { %v50_v20 = vadd.f32 %v49_v15, %v48_v17  ;;  %v126_v50 = vadd.f32 %v125_v41, %v124_v44  ;;  %v67_v63 = vsel %vm39_vm0, %v421_v54, 0.0  ;;  %v104_v4 = vmul.f32 %v362_v21, %v362_v21  ;;  %v451_v15 = vld [vmem:[%s735_s0 + $0x88] sm:$0xff] }
   0xc   :  { %v133_v5 = vsel %vm39_vm0, %v102_v52, 0.0  ;;  %v69_v11 = vsel %vm39_vm0, %v431_v60, 0.0  ;;  %v105_v12 = vmul.f32 %v379_v29, %v379_v29  ;;  %v135_v14 = vsel %vm39_vm0, %v103_v58, 0.0  ;;  %v501_v52 = vld [vmem:[%s735_s0 + $0xb0] sm:$0xff] }
   0xd   :  { %v52_v26 = vadd.f32 %v51_v18, %v50_v20  ;;  %v128_v56 = vadd.f32 %v127_v47, %v126_v50  ;;  %v71_v20 = vsel %vm39_vm0, %v441_v6, 0.0  ;;  %v137_v23 = vsel %vm39_vm0, %v104_v4, 0.0 }
   0xe   :  { %v107_v28 = vmul.f32 %v401_v42, %v401_v42  ;;  %v75_v34 = vsel %vm39_vm0, %v461_v24, 0.0  ;;  %v108_v35 = vmul.f32 %v411_v48, %v411_v48  ;;  %v110_v50 = vmul.f32 %v431_v60, %v431_v60 }
   0xf   :  { %v54_v30 = vadd.f32 %v53_v22, %v52_v26  ;;  %v130_v62 = vadd.f32 %v129_v53, %v128_v56  ;;  %v106_v22 = vmul.f32 %v391_v36, %v391_v36  ;;  %v112_v4 = vmul.f32 %v451_v15, %v451_v15 }
  0x10   :  { %v143_v44 = vsel %vm39_vm0, %v107_v28, 0.0  ;;  %v115_v28 = vmul.f32 %v481_v38, %v481_v38 }
  0x11   :  { %v56_v37 = vadd.f32 %v55_v27, %v54_v30  ;;  %v132_v9 = vadd.f32 %v131_v59, %v130_v62  ;;  %v73_v27 = vsel %vm39_vm0, %v451_v15, 0.0  ;;  %v139_v30 = vsel %vm39_vm0, %v105_v12, 0.0  ;;  %v511_v59 = vld [vmem:[%s735_s0 + $0xb8] sm:$0xff] }
  0x12   :  { %v85_v12 = vsel %vm39_vm0, %v511_v59, 0.0 }
  0x13   :  { %v58_v43 = vadd.f32 %v57_v31, %v56_v37  ;;  %v134_v18 = vadd.f32 %v133_v5, %v132_v9  ;;  %v471_v31 = vld [vmem:[%s735_s0 + $0x98] sm:$0xff]  ;;  %v141_v37 = vsel %vm39_vm0, %v106_v22, 0.0  ;;  %v149_v5 = vsel %vm39_vm0, %v110_v50, 0.0 }
  0x14   :  { %v77_v41 = vsel %vm39_vm0, %v471_v31, 0.0 }
  0x15   :  { %v60_v49 = vadd.f32 %v59_v39, %v58_v43  ;;  %v136_v26 = vadd.f32 %v135_v14, %v134_v18  ;;  %v109_v43 = vmul.f32 %v421_v54, %v421_v54  ;;  %v113_v14 = vmul.f32 %v461_v24, %v461_v24 }
  0x17   :  { %v62_v55 = vadd.f32 %v61_v45, %v60_v49  ;;  %v138_v33 = vadd.f32 %v137_v23, %v136_v26  ;;  %v491_v45 = vld [vmem:[%s735_s0 + $0xa8] sm:$0xff]  ;;  %v79_v49 = vsel %vm39_vm0, %v481_v38, 0.0  ;;  %v147_v58 = vsel %vm39_vm0, %v109_v43, 0.0 }
  0x18   :  { %v81_v56 = vsel %vm39_vm0, %v491_v45, 0.0  ;;  %v114_v23 = vmul.f32 %v471_v31, %v471_v31 }
  0x19   :  { %v64_v61 = vadd.f32 %v63_v51, %v62_v55  ;;  %v140_v40 = vadd.f32 %v139_v30, %v138_v33  ;;  %v145_v51 = vsel %vm39_vm0, %v108_v35, 0.0  ;;  %v155_v30 = vsel %vm39_vm0, %v113_v14, 0.0 }
  0x1a   :  { %v157_v35 = vsel %vm39_vm0, %v114_v23, 0.0 }
  0x1b   :  { %v66_v8 = vadd.f32 %v65_v57, %v64_v61  ;;  %v142_v47 = vadd.f32 %v141_v37, %v140_v40  ;;  %v111_v57 = vmul.f32 %v441_v6, %v441_v6  ;;  %v117_v40 = vmul.f32 %v501_v52, %v501_v52 }
  0x1d   :  { %v68_v17 = vadd.f32 %v67_v63, %v66_v8  ;;  %v144_v55 = vadd.f32 %v143_v44, %v142_v47  ;;  %v83_v63 = vsel %vm39_vm0, %v501_v52, 0.0  ;;  %v521_v8 = vld [vmem:[%s735_s0 + $0xc0] sm:$0xff] }
  0x1e   :  { %v87_v22 = vsel %vm39_vm0, %v521_v8, 0.0 }
  0x1f   :  { %v70_v25 = vadd.f32 %v69_v11, %v68_v17  ;;  %v146_v62 = vadd.f32 %v145_v51, %v144_v55  ;;  %v151_v17 = vsel %vm39_vm0, %v111_v57, 0.0  ;;  %v119_v51 = vmul.f32 %v521_v8, %v521_v8 }
  0x21   :  { %v72_v32 = vadd.f32 %v71_v20, %v70_v25  ;;  %v148_v11 = vadd.f32 %v147_v58, %v146_v62  ;;  %v153_v25 = vsel %vm39_vm0, %v112_v4, 0.0 }
  0x23   :  { %v74_v39 = vadd.f32 %v73_v27, %v72_v32  ;;  %v150_v20 = vadd.f32 %v149_v5, %v148_v11 }
  0x25   :  { %v76_v46 = vadd.f32 %v75_v34, %v74_v39  ;;  %v152_v27 = vadd.f32 %v151_v17, %v150_v20  ;;  %v116_v34 = vmul.f32 %v491_v45, %v491_v45 }
  0x27   :  { %v78_v53 = vadd.f32 %v77_v41, %v76_v46  ;;  %v154_v33 = vadd.f32 %v153_v25, %v152_v27  ;;  %v159_v41 = vsel %vm39_vm0, %v115_v28, 0.0  ;;  %v118_v46 = vmul.f32 %v511_v59, %v511_v59 }
  0x28   :  { %v161_v47 = vsel %vm39_vm0, %v116_v34, 0.0  ;;  %v188_v28 = vlaneseq }
  0x29   :  { %v80_v61 = vadd.f32 %v79_v49, %v78_v53  ;;  %v156_v39 = vadd.f32 %v155_v30, %v154_v33  ;;  %v163_v53 = vsel %vm39_vm0, %v117_v40, 0.0 }
  0x2a   :  { %v189_v30 = vshrl.u32 %v188_v28, 7 }
  0x2b   :  { %v82_v9 = vadd.f32 %v81_v56, %v80_v61  ;;  %v158_v44 = vadd.f32 %v157_v35, %v156_v39  ;;  %v165_v56 = vsel %vm39_vm0, %v118_v46, 0.0  ;;  %v167_v61 = vsel %vm39_vm0, %v119_v51, 0.0 }
  0x2c   :  { %v190_v33 = vsub.s32 0, %v189_v30 }
  0x2d   :  { %v84_v18 = vadd.f32 %v83_v63, %v82_v9  ;;  %v160_v50 = vadd.f32 %v159_v41, %v158_v44 }
  0x2f   :  { %v86_v26 = vadd.f32 %v85_v12, %v84_v18  ;;  %v162_v55 = vadd.f32 %v161_v47, %v160_v50 }
  0x31   :  { %v88_v32 = vadd.f32 %v87_v22, %v86_v26  ;;  %v164_v58 = vadd.f32 %v163_v53, %v162_v55 }
  0x33   :  { %v89_v37 = vrot.slane %v88_v32, 4  ;;  %v166_v62 = vadd.f32 %v165_v56, %v164_v58 }
  0x35   :  { %v90_v43 = vadd.f32 %v89_v37, %v88_v32  ;;  %v168_v4 = vadd.f32 %v167_v61, %v166_v62  ;;  %v182_v32 = vld [vmem:[%s736_s1] sm:$0x1] }
  0x36   :  { %v184_v37 = vld [vmem:[%s737_s2] sm:$0x1] }
  0x37   :  { %v91_v49 = vrot.slane %v90_v43, 2  ;;  %v169_v5 = vrot.slane %v168_v4, 4 }
  0x39   :  { %v92_v57 = vadd.f32 %v91_v49, %v90_v43  ;;  %v170_v11 = vadd.f32 %v169_v5, %v168_v4 }
  0x3b   :  { %v93_v63 = vrot.slane %v92_v57, 1  ;;  %v171_v12 = vrot.slane %v170_v11, 2 }
  0x3d   :  { %v94_v9 = vadd.f32 %v93_v63, %v92_v57  ;;  %v172_v14 = vadd.f32 %v171_v12, %v170_v11 }
  0x3f   :  { %v175_v17 = vmul.f32 0.005, %v94_v9  ;;  %v173_v18 = vrot.slane %v172_v14, 1 }
  0x41   :  { %v174_v20 = vadd.f32 %v173_v18, %v172_v14  ;;  %v177_v22 = vmul.f32 %v175_v17, %v175_v17 }
  0x43   :  { %v176_v23 = vmul.f32 0.005, %v174_v20 }
  0x45   :  { %v178_v25 = vsub.f32 %v176_v23, %v177_v22 }
  0x47   :  { %v179_v26 = vmax.f32 %v178_v25, 0.0 }
  0x49   :  { %v180_v27 = vadd.f32 1e-05, %v179_v26 }
  0x4b   :  { %278 = vrsqrt.f32 %v180_v27 }
  0x58   :  { %v279_v34 = vpop.eup %278 }
  0x59   :  { %v183_v35 = vmul.f32 %v279_v34, %v182_v32 }
  0x5b   :  { %v185_v39 = vmul.f32 %v183_v35, %v175_v17  ;;  %v556_v40 = vrot.slane %v183_v35, %v190_v33 }
  0x5d   :  { %v186_v41 = vsub.f32 %v184_v37, %v185_v39  ;;  %v193_v43 = vmul.f32 %v556_v40, %v303_v0  ;;  %v194_v44 = vmul.f32 %v556_v40, %v308_v1  ;;  %v195_v46 = vmul.f32 %v556_v40, %v313_v2 }
  0x5e   :  { %v196_v47 = vmul.f32 %v556_v40, %v318_v3  ;;  %v197_v49 = vmul.f32 %v556_v40, %v329_v7  ;;  %v198_v50 = vmul.f32 %v556_v40, %v336_v10  ;;  %v199_v51 = vmul.f32 %v556_v40, %v343_v13 }
  0x5f   :  { %v572_v53 = vrot.slane %v186_v41, %v190_v33  ;;  %v200_v0 = vmul.f32 %v556_v40, %v350_v16  ;;  %v201_v1 = vmul.f32 %v556_v40, %v357_v19  ;;  %v202_v2 = vmul.f32 %v556_v40, %v362_v21 }
  0x60   :  { %v203_v3 = vmul.f32 %v556_v40, %v379_v29  ;;  %v204_v7 = vmul.f32 %v556_v40, %v391_v36  ;;  %v205_v10 = vmul.f32 %v556_v40, %v401_v42  ;;  %v206_v13 = vmul.f32 %v556_v40, %v411_v48 }
  0x61   :  { %v224_v16 = vadd.f32 %v572_v53, %v193_v43  ;;  %v225_v55 = vadd.f32 %v572_v53, %v194_v44  ;;  %v226_v19 = vadd.f32 %v572_v53, %v195_v46  ;;  %v227_v21 = vadd.f32 %v572_v53, %v196_v47 }
  0x62   :  { %v228_v56 = vadd.f32 %v572_v53, %v197_v49  ;;  %v229_v29 = vadd.f32 %v572_v53, %v198_v50  ;;  %v230_v36 = vadd.f32 %v572_v53, %v199_v51  ;;  %v231_v57 = vadd.f32 %v572_v53, %v200_v0 }
  0x63   :  { %249 = vst.msk [vmem:[%s738_s3] sm:$0xff] %vm39_vm0, %v224_v16  ;;  %250 = vst.msk [vmem:[%s738_s3 + $0x8] sm:$0xff] %vm39_vm0, %v225_v55  ;;  %v232_v42 = vadd.f32 %v572_v53, %v201_v1  ;;  %v233_v48 = vadd.f32 %v572_v53, %v202_v2  ;;  %v234_v58 = vadd.f32 %v572_v53, %v203_v3 }
  0x64   :  { %251 = vst.msk [vmem:[%s738_s3 + $0x10] sm:$0xff] %vm39_vm0, %v226_v19  ;;  %252 = vst.msk [vmem:[%s738_s3 + $0x18] sm:$0xff] %vm39_vm0, %v227_v21  ;;  %v235_v61 = vadd.f32 %v572_v53, %v204_v7  ;;  %v236_v62 = vadd.f32 %v572_v53, %v205_v10  ;;  %v237_v63 = vadd.f32 %v572_v53, %v206_v13 }
  0x65   :  { %253 = vst.msk [vmem:[%s738_s3 + $0x20] sm:$0xff] %vm39_vm0, %v228_v56  ;;  %254 = vst.msk [vmem:[%s738_s3 + $0x28] sm:$0xff] %vm39_vm0, %v229_v29  ;;  %v207_v4 = vmul.f32 %v556_v40, %v421_v54  ;;  %v208_v5 = vmul.f32 %v556_v40, %v431_v60  ;;  %v209_v54 = vmul.f32 %v556_v40, %v441_v6 }
  0x66   :  { %255 = vst.msk [vmem:[%s738_s3 + $0x30] sm:$0xff] %vm39_vm0, %v230_v36  ;;  %256 = vst.msk [vmem:[%s738_s3 + $0x38] sm:$0xff] %vm39_vm0, %v231_v57  ;;  %v210_v60 = vmul.f32 %v556_v40, %v451_v15  ;;  %v211_v9 = vmul.f32 %v556_v40, %v461_v24  ;;  %v212_v11 = vmul.f32 %v556_v40, %v471_v31 }
  0x67   :  { %257 = vst.msk [vmem:[%s738_s3 + $0x40] sm:$0xff] %vm39_vm0, %v232_v42  ;;  %258 = vst.msk [vmem:[%s738_s3 + $0x48] sm:$0xff] %vm39_vm0, %v233_v48  ;;  %v238_v6 = vadd.f32 %v572_v53, %v207_v4  ;;  %v239_v15 = vadd.f32 %v572_v53, %v208_v5  ;;  %v213_v24 = vmul.f32 %v556_v40, %v481_v38 }
  0x68   :  { %259 = vst.msk [vmem:[%s738_s3 + $0x50] sm:$0xff] %vm39_vm0, %v234_v58  ;;  %260 = vst.msk [vmem:[%s738_s3 + $0x58] sm:$0xff] %vm39_vm0, %v235_v61  ;;  %v214_v31 = vmul.f32 %v556_v40, %v491_v45  ;;  %v240_v12 = vadd.f32 %v572_v53, %v209_v54  ;;  %v241_v14 = vadd.f32 %v572_v53, %v210_v60 }
  0x69   :  { %261 = vst.msk [vmem:[%s738_s3 + $0x60] sm:$0xff] %vm39_vm0, %v236_v62  ;;  %262 = vst.msk [vmem:[%s738_s3 + $0x68] sm:$0xff] %vm39_vm0, %v237_v63  ;;  %v242_v17 = vadd.f32 %v572_v53, %v211_v9  ;;  %v243_v18 = vadd.f32 %v572_v53, %v212_v11  ;;  %v244_v38 = vadd.f32 %v572_v53, %v213_v24 }
  0x6a   :  { %263 = vst.msk [vmem:[%s738_s3 + $0x70] sm:$0xff] %vm39_vm0, %v238_v6  ;;  %264 = vst.msk [vmem:[%s738_s3 + $0x78] sm:$0xff] %vm39_vm0, %v239_v15  ;;  %v245_v45 = vadd.f32 %v572_v53, %v214_v31  ;;  %v215_v20 = vmul.f32 %v556_v40, %v501_v52  ;;  %v216_v22 = vmul.f32 %v556_v40, %v511_v59 }
  0x6b   :  { %265 = vst.msk [vmem:[%s738_s3 + $0x80] sm:$0xff] %vm39_vm0, %v240_v12  ;;  %266 = vst.msk [vmem:[%s738_s3 + $0x88] sm:$0xff] %vm39_vm0, %v241_v14  ;;  %v217_v52 = vmul.f32 %v556_v40, %v521_v8 }
  0x6c   :  { %267 = vst.msk [vmem:[%s738_s3 + $0x90] sm:$0xff] %vm39_vm0, %v242_v17  ;;  %268 = vst.msk [vmem:[%s738_s3 + $0x98] sm:$0xff] %vm39_vm0, %v243_v18  ;;  %v246_v59 = vadd.f32 %v572_v53, %v215_v20  ;;  %v247_v23 = vadd.f32 %v572_v53, %v216_v22 }
  0x6d   :  { %269 = vst.msk [vmem:[%s738_s3 + $0xa0] sm:$0xff] %vm39_vm0, %v244_v38  ;;  %270 = vst.msk [vmem:[%s738_s3 + $0xa8] sm:$0xff] %vm39_vm0, %v245_v45  ;;  %v248_v25 = vadd.f32 %v572_v53, %v217_v52 }
  0x6e   :  { %271 = vst.msk [vmem:[%s738_s3 + $0xb0] sm:$0xff] %vm39_vm0, %v246_v59  ;;  %272 = vst.msk [vmem:[%s738_s3 + $0xb8] sm:$0xff] %vm39_vm0, %v247_v23 }
  0x6f   :  { %273 = vst.msk [vmem:[%s738_s3 + $0xc0] sm:$0xff] %vm39_vm0, %v248_v25 }

</bundles_post_ra>
